<compile_context>
chip_gen: v7x
topology: tpu7x:2x2x1
jax: 0.10.0
libtpu: 0.0.40
codegen_flags: <defaults>
</compile_context>

<pallas_src>
import functools
import math

import jax
import jax.numpy as jnp
from jax import lax
from jax.experimental import pallas as pl
from jax.experimental.pallas import tpu as pltpu

_MIB = 1024 * 1024


def _vmem_capacity_bytes() -> int:
    """Physical VMEM of the attached TPU; conservative (v7x-sized) fallback."""
    try:
        return int(pltpu.get_tpu_info().vmem_capacity_bytes)
    except Exception:
        return 64 * _MIB


def _choose_block(rows: int, cols: int, itemsize: int, target_bytes: int):
    """Pick a (block_rows, block_cols) tile close to `target_bytes`.

    block_cols is the full (lane-dense) row unless a single row exceeds the
    target and the row length is 128-divisible (then chunk columns).
    block_rows is sublane-aligned and capped so the grid keeps >= 4 row steps
    when the array is big enough (pipeline overlap + both v7x TensorCores).
    """
    col_bytes = cols * itemsize
    if col_bytes <= target_bytes or cols % 128 != 0:
        tc = cols
    else:
        tc = max(((target_bytes // itemsize) // 128) * 128, 128)

    align = max(8, 32 // max(itemsize, 1))            # f32: 8, bf16: 16, int8: 32
    tr = max(target_bytes // max(tc * itemsize, 1), 1)
    tr = min(tr, pl.cdiv(rows, 4))                    # prefer >= 4 row steps
    tr = (tr // align) * align
    if tr <= 0 or tr >= rows:
        tr = rows                                     # tiny input: one block (full dims)
    return int(tr), int(tc)


def _pe_add_kernel(x_ref, freq_ref, phase_ref, o_ref, *, block_rows: int):
    # x_ref/o_ref: (tr, tc);  freq_ref/phase_ref: (1, tc) f32.
    # Absolute sequence position of every row in this tile (row index == position).
    pos0 = pl.program_id(0) * block_rows
    pos = (pos0 + lax.broadcasted_iota(jnp.int32, (block_rows, 1), 0)).astype(jnp.float32)
    # Single EUP transcendental per element: sin(a + pi/2) == cos(a).
    pe = jnp.sin(pos * freq_ref[...] + phase_ref[...])
    # Add in x's dtype (bf16 VPU add on v6e/v7x); torch would promote bf16 -> f32.
    o_ref[...] = (x_ref[...] + pe.astype(x_ref.dtype)).astype(o_ref.dtype)


def init_positional_encoding(d_model: int, max_len: int = 5000):
    """Tiny per-column frequency / phase rows (analog of the module's `pe` buffer)."""
    assert d_model % 2 == 0, "d_model must be even (as the PyTorch module requires)"
    div_term = jnp.exp(
        jnp.arange(0, d_model, 2, dtype=jnp.float32) * (-math.log(10000.0) / d_model)
    )                                                            # (D/2,)
    freq = jnp.repeat(div_term, 2)[None, :]                      # (1, D): col c -> w[c//2]
    phase = ((jnp.arange(d_model) % 2).astype(jnp.float32) * (math.pi / 2.0))[None, :]
    return {"freq": freq, "phase": phase, "d_model": d_model, "max_len": max_len}


def positional_encoding_forward(x: jnp.ndarray, params, *, alias_input: bool = False):
    """x: (S, B, D) -> x + sinusoidal_pe[:S] broadcast over batch (same dtype as x)."""
    S, B, D = x.shape
    assert D == params["d_model"], "last dim of x must equal d_model"
    assert S <= params["max_len"], "sequence length exceeds max_len"

    cols = B * D
    x2 = x.reshape(S, cols)                          # free row-major view
    # The PE pattern repeats every D lanes across the flattened (batch, d) row.
    freq = jnp.tile(params["freq"], (1, B))          # (1, B*D), tiny side input
    phase = jnp.tile(params["phase"], (1, B))

    itemsize = jnp.dtype(x.dtype).itemsize
    cap = _vmem_capacity_bytes()
    target = min(6 * _MIB, cap // 20)                # ~6 MiB on v5e/v6e, ~3 MiB on v7x
    tr, tc = _choose_block(S, cols, itemsize, target)
    grid = (pl.cdiv(S, tr), pl.cdiv(cols, tc))

    tile_bytes = tr * tc * itemsize
    # 2x(x) + 2x(out) double-buffered tiles + freq/phase rows + compiler slack.
    vmem_limit = 4 * tile_bytes + 4 * tc * 4 + 16 * _MIB
    vmem_limit = int(min(max(vmem_limit, 32 * _MIB), cap - 4 * _MIB))

    kernel = functools.partial(_pe_add_kernel, block_rows=tr)

    out = pl.pallas_call(
        kernel,
        out_shape=jax.ShapeDtypeStruct((S, cols), x.dtype),
        grid=grid,
        in_specs=[
            pl.BlockSpec((tr, tc), lambda i, j: (i, j)),   # x tile (streamed, lane-dense)
            pl.BlockSpec((1, tc), lambda i, j: (0, j)),    # freq row (resident)
            pl.BlockSpec((1, tc), lambda i, j: (0, j)),    # phase row (resident)
        ],
        out_specs=pl.BlockSpec((tr, tc), lambda i, j: (i, j)),
        input_output_aliases=({0: 0} if alias_input else {}),
        compiler_params=pltpu.CompilerParams(
            dimension_semantics=("parallel", "parallel"),
            vmem_limit_bytes=vmem_limit,
        ),
    )(x2, freq, phase)

    return out.reshape(S, B, D)


def make_positional_encoding_reference(d_model: int, max_len: int = 5000) -> jnp.ndarray:
    """Plain-JAX replica of the PyTorch `pe` buffer, used only for the correctness check."""
    position = jnp.arange(max_len, dtype=jnp.float32)[:, None]
    div_term = jnp.exp(
        jnp.arange(0, d_model, 2, dtype=jnp.float32) * (-math.log(10000.0) / d_model)
    )
    pe = jnp.zeros((max_len, d_model), dtype=jnp.float32)
    pe = pe.at[:, 0::2].set(jnp.sin(position * div_term))
    pe = pe.at[:, 1::2].set(jnp.cos(position * div_term))
    return pe[:, None, :]                                        # (max_len, 1, D)


if __name__ == "__main__":
    # TODO(synk): this covers eval/inference semantics only (the given module has no dropout).
    seq_len, batch, d_model = 8, 2, 32
    max_len = 5000

    key = jax.random.PRNGKey(0)
    x = jax.random.normal(key, (seq_len, batch, d_model), dtype=jnp.float32)

    params = init_positional_encoding(d_model, max_len)
    out = positional_encoding_forward(x, params)
    out = jax.block_until_ready(out)

    pe_ref = make_positional_encoding_reference(d_model, max_len)
    ref = x + pe_ref[:seq_len, :]
    assert out.shape == (seq_len, batch, d_model)
    assert jnp.allclose(out, ref, atol=1e-4, rtol=1e-4), float(jnp.max(jnp.abs(out - ref)))

    # Second small check with a multi-step row grid (exercises the iota/pos0 offsets).
    s2, b2, d2 = 64, 4, 128
    x2 = jax.random.normal(jax.random.PRNGKey(1), (s2, b2, d2), dtype=jnp.float32)
    params2 = init_positional_encoding(d2, max_len)
    out2 = jax.block_until_ready(positional_encoding_forward(x2, params2))
    ref2 = x2 + make_positional_encoding_reference(d2, max_len)[:s2, :]
    assert jnp.allclose(out2, ref2, atol=1e-4, rtol=1e-4), float(jnp.max(jnp.abs(out2 - ref2)))

    print("KERNEL_OK")
</pallas_src>

<mosaic_0001>
module attributes {stable_mosaic.version = 11 : i64} {
  func.func @_pe_add_kernel(%arg0: i32, %arg1: i32, %arg2: memref<8x64xf32, #tpu.memory_space<vmem>>, %arg3: memref<1x64xf32, #tpu.memory_space<vmem>>, %arg4: memref<1x64xf32, #tpu.memory_space<vmem>>, %arg5: memref<8x64xf32, #tpu.memory_space<vmem>>) attributes {dimension_semantics = [#tpu.dimension_semantics<parallel>, #tpu.dimension_semantics<parallel>], iteration_bounds = array<i64: 1, 1>, scalar_prefetch = 0 : i64, scratch_operands = 0 : i64, tpu.core_type = #tpu.core_type<tc>, window_params = [{transform_indices = @transform_0, window_bounds = array<i64: 8, 64>}, {transform_indices = @transform_1, window_bounds = array<i64: 1, 64>}, {transform_indices = @transform_2, window_bounds = array<i64: 1, 64>}, {transform_indices = @transform_3, window_bounds = array<i64: 8, 64>}]} {
    %c8_i32 = arith.constant 8 : i32
    %0 = arith.muli %arg0, %c8_i32 : i32
    %1 = tpu.iota {dimensions = array<i32: 0>} : vector<8x1xi32>
    %2 = vector.broadcast %0 : i32 to vector<8x1xi32>
    %3 = arith.addi %2, %1 : vector<8x1xi32>
    %4 = arith.sitofp %3 : vector<8x1xi32> to vector<8x1xf32>
    %c0 = arith.constant 0 : index
    %c0_0 = arith.constant 0 : index
    %5 = vector.load %arg3[%c0, %c0_0] : memref<1x64xf32, #tpu.memory_space<vmem>>, vector<1x64xf32>
    %6 = vector.broadcast %4 : vector<8x1xf32> to vector<8x64xf32>
    %7 = vector.broadcast %5 : vector<1x64xf32> to vector<8x64xf32>
    %8 = arith.mulf %6, %7 : vector<8x64xf32>
    %c0_1 = arith.constant 0 : index
    %c0_2 = arith.constant 0 : index
    %9 = vector.load %arg4[%c0_1, %c0_2] : memref<1x64xf32, #tpu.memory_space<vmem>>, vector<1x64xf32>
    %10 = vector.broadcast %9 : vector<1x64xf32> to vector<8x64xf32>
    %11 = arith.addf %8, %10 : vector<8x64xf32>
    %12 = math.sin %11 : vector<8x64xf32>
    %c0_3 = arith.constant 0 : index
    %c0_4 = arith.constant 0 : index
    %13 = vector.load %arg2[%c0_3, %c0_4] : memref<8x64xf32, #tpu.memory_space<vmem>>, vector<8x64xf32>
    %14 = arith.addf %13, %12 : vector<8x64xf32>
    %c0_5 = arith.constant 0 : index
    %c0_6 = arith.constant 0 : index
    %15 = vector.load %arg5[%c0_5, %c0_6] : memref<8x64xf32, #tpu.memory_space<vmem>>, vector<8x64xf32>
    tpu.vector_store %arg5[%c0_5, %c0_6], %14 {strides = array<i32>} : memref<8x64xf32, #tpu.memory_space<vmem>>, vector<8x64xf32>,
    return
  }
  func.func @transform_0(%arg0: i32, %arg1: i32) -> (i32, i32) {
    %c0_i32 = arith.constant 0 : i32
    return %arg0, %arg1 : i32, i32
  }
  func.func @transform_1(%arg0: i32, %arg1: i32) -> (i32, i32) {
    %c0_i32 = arith.constant 0 : i32
    %c0_i32_0 = arith.constant 0 : i32
    return %c0_i32, %arg1 : i32, i32
  }
  func.func @transform_2(%arg0: i32, %arg1: i32) -> (i32, i32) {
    %c0_i32 = arith.constant 0 : i32
    %c0_i32_0 = arith.constant 0 : i32
    return %c0_i32, %arg1 : i32, i32
  }
  func.func @transform_3(%arg0: i32, %arg1: i32) -> (i32, i32) {
    %c0_i32 = arith.constant 0 : i32
    return %arg0, %arg1 : i32, i32
  }
}

</mosaic_0001>

<bundles_post_ra>
// kernel: tpu_custom_call.1
= control target key start
LH: loop header
LB: loop body
LE: loop exit
PB: predicated region body
PF: predicated region fallthrough
CT: control target
= control target key end

     0   :  { %8 = vsyncpa [#allocation3], 0  ;;  %s321_s0 = inlined_call_operand.hbm [shape: f32[8,64], index: 0, kind: input, shape index: {}]   ;;  %s322_s1 = inlined_call_operand.vmem [shape: f32[1,64], index: 1, kind: input, shape index: {}]   ;;  %s323_s2 = inlined_call_operand.vmem [shape: f32[1,64], index: 2, kind: input, shape index: {}]   ;;  %s324_s3 = inlined_call_operand.hbm [shape: f32[8,64], index: 3, kind: output, shape index: {}]  }
   0x1   :  { %9 = vsyncpa [#allocation4], 0  ;;  %s242_s12 = smov [#allocation2]   ;;  %s194_s16 = scalar_lea.hbm %s321_s0, 128 }
   0x2   :  { %s16_s13 = sshll.u32 %s242_s12, 4  ;;  %p195_p0 = scmp.ne.s32.totalorder %s321_s0, %s194_s16  ;;  %s17_s13 = int_to_ptr.vmem [resolvable:$true] %s16_s13 }
   0x3   :  { %p198_p1 = scmp.lt.u32.totalorder %s194_s16, %s321_s0 }
   0x5   :  { %p200_p2 = pnand %p198_p1, %p195_p0 }
   0x7   :  { %203 = shalt.err (!%p200_p2)
}
   0x8   :  { %s204_s21 = scalar_lea.vmem %s17_s13, 128  ;;  %p209_p4 = scmp.lt.s32.totalorder %s17_s13, %s17_s13 }
   0x9   :  { %p205_p3 = scmp.ne.s32.totalorder %s17_s13, %s204_s21  ;;  %p210_p5 = scmp.lt.s32.totalorder %s204_s21, %s204_s21 }
   0xb   :  { %p211_p6 = por %p210_p5, %p209_p4 }
   0xd   :  { %p212_p7 = pnand %p211_p6, %p205_p3 }
   0xf   :  { %215 = shalt.err (!%p212_p7)
}
  0x10   :  { %19 = dma.hbm_to_vmem [thread:$0]  %s321_s0, 128, %s17_s13, [#allocation3]  }
  0x11   :  { %238 = dma.done.wait [#allocation3], 128  }
  0x12   :  { %239 = vsyncadd [#allocation3], 4294967168  ;;  %v28_v0 = vlaneseq  ;;  %v172_v3 = vld [vmem:[%s322_s1] ss:$0 sm:$0xff]  ;;  %v243_v18 = vmov 683565275  }
  0x13   :  { %v173_v4 = vld [vmem:[%s323_s2] ss:$0 sm:$0xff]  ;;  %v244_v20 = vmov 2475754826   ;;  %v245_v22 = vmov 2131351028  }
  0x14   :  { %v29_v1 = vshrl.u32 %v28_v0, 7  ;;  %v246_v24 = vmov 2102212464   ;;  %v247_v26 = vmov 920167782   ;;  %s249_s0 = smov [#allocation5]  }
  0x15   :  { %v248_v33 = vmov 1326507024   ;;  %s163_s1 = sshll.u32 %s249_s0, 4  ;;  %vm155_vm13 = vcmask 523264   ;;  %s164_s1 = int_to_ptr.vmem [resolvable:$true] %s163_s1 }
  0x16   :  { %v32_v2 = vcvt.s32.f32 %v29_v1  ;;  %s216_s2 = scalar_lea.vmem %s164_s1, 128  ;;  %p221_p9 = scmp.lt.s32.totalorder %s164_s1, %s164_s1 }
  0x17   :  { %p217_p8 = scmp.ne.s32.totalorder %s164_s1, %s216_s2  ;;  %p222_p10 = scmp.lt.s32.totalorder %s216_s2, %s216_s2 }
  0x18   :  { %v40_v5 = vmul.f32 %v172_v3, %v32_v2 }
  0x19   :  { %p223_p11 = por %p222_p10, %p221_p9 }
  0x1a   :  { %v288_v6 = vadd.f32 %v173_v4, %v40_v5 }
  0x1b   :  { %p224_p12 = pnand %p223_p11, %p217_p8 }
  0x1c   :  { %v52_v7 = vand.u32 2139095040, %v288_v6  ;;  %v49_v9 = vand.u32 2147483647, %v288_v6  ;;  %vm51_vm7 = vcmp.lt.s32.totalorder %v288_v6, 0  ;;  %vm141_vm12 = vweird.f32 %v288_v6 }
  0x1e   :  { %v53_v8 = vshrl.u32 %v52_v7, 23  ;;  %v56_v12 = vand.u32 8388607, %v49_v9  ;;  %vm50_vm8 = vcmp.le.f32.partialorder %v49_v9, 0.7853982 }
  0x20   :  { %v174_v10 = vadd.s32 4294967169, %v53_v8  ;;  %v57_v15 = vor.u32 8388608, %v56_v12 }
  0x22   :  { %v59_v11 = vadd.s32 1, %v174_v10  ;;  %v97_v35 = vshll.u32 %v57_v15, 8 }
  0x24   :  { %vm60_vm0 = vcmp.gt.s32.totalorder %v59_v11, 0 }
  0x25   :  { %v61_v13 = vsel %vm60_vm0, %v59_v11, 0 }
  0x26   :  { %v63_v14 = vand.u32 31, %v61_v13  ;;  %v62_v16 = vshrl.u32 %v61_v13, 5 }
  0x28   :  { %v64_v17 = vsub.s32 32, %v63_v14  ;;  %v66_v19 = vshll.u32 %v243_v18, %v63_v14  ;;  %v69_v21 = vshll.u32 %v244_v20, %v63_v14  ;;  %v72_v23 = vshll.u32 %v245_v22, %v63_v14 }
  0x29   :  { %v75_v25 = vshll.u32 %v246_v24, %v63_v14  ;;  %v78_v27 = vshll.u32 %v247_v26, %v63_v14  ;;  %vm81_vm1 = vcmp.lt.s32.totalorder %v62_v16, 1  ;;  %vm84_vm2 = vcmp.lt.s32.totalorder %v62_v16, 4 }
  0x2a   :  { %v65_v28 = vshrl.u32 %v243_v18, %v64_v17  ;;  %v67_v29 = vshrl.u32 %v244_v20, %v64_v17  ;;  %v70_v30 = vshrl.u32 %v245_v22, %v64_v17  ;;  %v73_v31 = vshrl.u32 %v246_v24, %v64_v17 }
  0x2b   :  { %v76_v32 = vshrl.u32 %v247_v26, %v64_v17  ;;  %v79_v34 = vshrl.u32 %v248_v33, %v64_v17  ;;  %vm82_vm3 = vcmp.lt.s32.totalorder %v62_v16, 2  ;;  %vm83_vm4 = vcmp.lt.s32.totalorder %v62_v16, 3  ;;  %v153_v33 = vld [vmem:[#allocation2] sm:$0xff] }
  0x2c   :  { %v68_v36 = vor.u32 %v67_v29, %v66_v19  ;;  %v71_v37 = vor.u32 %v70_v30, %v69_v21  ;;  %v74_v38 = vor.u32 %v73_v31, %v72_v23 }
  0x2d   :  { %v77_v39 = vor.u32 %v76_v32, %v75_v25  ;;  %v80_v40 = vor.u32 %v79_v34, %v78_v27 }
  0x2e   :  { %v85_v41 = vsel %vm81_vm1, %v65_v28, %v68_v36  ;;  %v86_v42 = vsel %vm84_vm2, %v74_v38, 2102212464  ;;  %v89_v43 = vsel %vm81_vm1, %v68_v36, %v71_v37  ;;  %v93_v44 = vsel %vm81_vm1, %v71_v37, %v74_v38 }
  0x2f   :  { %v87_v45 = vsel %vm83_vm4, %v71_v37, %v86_v42  ;;  %v90_v46 = vsel %vm84_vm2, %v77_v39, 920167782  ;;  %v94_v47 = vsel %vm84_vm2, %v80_v40, 1326507024 }
  0x30   :  { %v91_v48 = vsel %vm83_vm4, %v74_v38, %v90_v46  ;;  %v95_v49 = vsel %vm83_vm4, %v77_v39, %v94_v47  ;;  %v88_v50 = vsel %vm82_vm3, %v85_v41, %v87_v45 }
  0x31   :  { %v92_v51 = vsel %vm82_vm3, %v89_v43, %v91_v48  ;;  %v96_v52 = vsel %vm82_vm3, %v93_v44, %v95_v49  ;;  %v104_v57 = vmul.u32 %v97_v35, %v88_v50 }
  0x32   :  { %v294_v53 = vmul.u32.u64.low %v97_v35, %v96_v52  ;;  %v295_v54 = vmul.u32.u64.high %v97_v35, %v96_v52, %v294_v53  ;;  %v297_v55 = vmul.u32.u64.low %v97_v35, %v92_v51  ;;  %v298_v56 = vmul.u32.u64.high %v97_v35, %v92_v51, %v297_v55 }
  0x34   :  { %vm106_vm5 = vc.u32 %v295_v54, %v297_v55  ;;  %v107_v58 = vadd.s32 1, %v298_v56  ;;  %v105_v5 = vadd.s32 %v297_v55, %v295_v54 }
  0x36   :  { %v108_v59 = vsel %vm106_vm5, %v107_v58, %v298_v56 }
  0x37   :  { %v109_v60 = vadd.s32 %v108_v59, %v104_v57 }
  0x39   :  { %v110_v61 = vadd.s32 536870912, %v109_v60 }
  0x3b   :  { %v111_v62 = vshrl.u32 %v110_v61, 30 }
  0x3d   :  { %v112_v63 = vshll.u32 %v111_v62, 30  ;;  %v135_v19 = vsub.s32 4, %v111_v62 }
  0x3f   :  { %v113_v0 = vsub.s32 %v109_v60, %v112_v63  ;;  %v136_v22 = vsel %vm51_vm7, %v135_v19, %v111_v62 }
  0x40   :  { %v138_v25 = vsel %vm50_vm8, 0, %v136_v22 }
  0x41   :  { %v115_v1 = vsub.s32 0, %v113_v0  ;;  %v142_v26 = vadd.s32 3, %v138_v25 }
  0x43   :  { %v175_v2 = vmin.u32 %v115_v1, %v113_v0  ;;  %v143_v27 = vand.u32 3, %v142_v26 }
  0x45   :  { %v117_v3 = vclz %v175_v2  ;;  %vm148_vm9 = vcmp.eq.s32.totalorder %v143_v27, 2  ;;  %vm145_vm10 = vcmp.eq.s32.totalorder %v143_v27, 0  ;;  %vm144_vm11 = vcmp.lt.s32.totalorder %v143_v27, 2 }
  0x47   :  { %v176_v4 = vadd.s32 4294967294, %v117_v3 }
  0x49   :  { %vm177_vm6 = vcmp.lt.s32.totalorder %v176_v4, 0 }
  0x4a   :  { %v120_v7 = vsel %vm177_vm6, 0, %v176_v4 }
  0x4b   :  { %v121_v8 = vsub.s32 32, %v120_v7  ;;  %v122_v10 = vshll.u32 %v113_v0, %v120_v7  ;;  %v125_v11 = vsub.s32 4294967266, %v120_v7 }
  0x4d   :  { %v123_v12 = vshrl.u32 %v105_v5, %v121_v8  ;;  %v126_v13 = vadd.s32 127, %v125_v11 }
  0x4f   :  { %v124_v14 = vor.u32 %v123_v12, %v122_v10  ;;  %v127_v15 = vshll.u32 %v126_v13, 23 }
  0x51   :  { %v128_v16 = vor.u32 4788187, %v127_v15  ;;  %v131_v17 = vcvt.s32.f32 %v124_v14 }
  0x53   :  { %v129_v18 = vand.u32 2147483647, %v128_v16 }
  0x55   :  { %v132_v20 = vmul.f32 %v131_v17, %v129_v18 }
  0x57   :  { %v133_v21 = vxor.u32 2147483648, %v132_v20 }
  0x59   :  { %v134_v23 = vsel %vm51_vm7, %v133_v21, %v132_v20 }
  0x5a   :  { %v137_v24 = vsel %vm50_vm8, %v288_v6, %v134_v23 }
  0x5b   :  { %190 = vcosq.f32 %v137_v24 }
  0x5c   :  { %192 = vsinq.f32 %v137_v24 }
  0x65   :  { %v191_v28 = vpop.eup %190 }
  0x66   :  { %v193_v29 = vpop.eup %192  ;;  %v149_v30 = vxor.u32 2147483648, %v191_v28 }
  0x67   :  { %v146_v31 = vxor.u32 2147483648, %v193_v29 }
  0x68   :  { %v150_v9 = vsel %vm148_vm9, %v149_v30, %v193_v29 }
  0x69   :  { %v147_v32 = vsel %vm145_vm10, %v191_v28, %v146_v31 }
  0x6a   :  { %v151_v34 = vsel %vm144_vm11, %v147_v32, %v150_v9 }
  0x6b   :  { %v152_v35 = vsel %vm141_vm12, nan, %v151_v34 }
  0x6c   :  { %v154_v36 = vadd.f32 %v153_v33, %v152_v35 }
  0x6e   :  { %156 = vst.msk [vmem:[#allocation5] sm:$0xff] %vm155_vm13, %v154_v36 }
  0x6f   :  { %227 = shalt.err (!%p224_p12)
}
  0x70   :  { %s228_s30 = scalar_lea.hbm %s324_s3, 128 }
  0x71   :  { %p229_p13 = scmp.ne.s32.totalorder %s324_s3, %s228_s30  ;;  %p232_p0 = scmp.lt.u32.totalorder %s228_s30, %s324_s3 }
  0x73   :  { %p234_p1 = pnand %p232_p0, %p229_p13 }
  0x75   :  { %237 = shalt.err (!%p234_p1)
}
  0x76   :  { %166 = dma.vmem_to_hbm [thread:$0]  %s164_s1, 128, %s324_s3, [#allocation4]  }
  0x77   :  { %240 = dma.done.wait [#allocation4], 128  }
  0x78   :  { %241 = vsyncadd [#allocation4], 4294967168 }
  0x79   :  { %170 = vsyncpa [#allocation3], 1 }
  0x7a   :  { %171 = vsyncpa [#allocation4], 1 }

</bundles_post_ra>
